<compile_context>
chip_gen: v7x
topology: tpu7x:2x2x1
jax: 0.10.0
libtpu: 0.0.40
codegen_flags: <defaults>
</compile_context>

<pallas_src>
import functools

import jax
import jax.numpy as jnp
from jax.experimental import pallas as pl
from jax.experimental.pallas import tpu as pltpu


def _round_up(x, m):
    return ((x + m - 1) // m) * m


# ----------------------------- Pallas kernel --------------------------------
def _fused_complex_conv_kernel(x_ref, w_ref, b_ref, o_ref, *, kh, kw, wp, lq):
    """Fused im2col + GEMM + bias via flat-shifted tap accumulation.

    x_ref: (B, C2p, L)         zero-padded input, (Hp*Wp) spatial flat on lanes
    w_ref: (kh*kw, OC2p, C2p)  fused complex weight, one (out,in) matrix per tap
    b_ref: (OC2p, 1)           fused bias
    o_ref: (B, OC2p, LQ)       o[b, :, q] = conv output at flat padded coord q
    """
    B = x_ref.shape[0]
    oc2p = o_ref.shape[1]
    for b in range(B):                           # B is tiny & static -> unrolled
        xb = x_ref[b]                            # (C2p, L): one aligned dense load
        acc = jnp.broadcast_to(b_ref[...], (oc2p, lq)).astype(jnp.float32)
        for t in range(kh * kw):
            di, dj = t // kw, t % kw
            off = di * wp + dj                   # flat-index shift of this tap
            win = xb[:, off:off + lq]            # (C2p, LQ) shifted window
            acc = acc + jnp.dot(w_ref[t], win,
                                preferred_element_type=jnp.float32)
        o_ref[b] = acc.astype(o_ref.dtype)


# ------------------------------- Wrapper -------------------------------------
def complex_conv2d(x, params, *, stride=1, padding=0):
    """Pallas implementation of ComplexConv2d.forward.

    x: (B, 2*Cin, H, W) float32 NCHW (real channels first, imag second).
    params: w_rr/w_ri/w_ir/w_ii (Cout, Cin, kh, kw); b_* (Cout,).
    Returns (B, 2*Cout, Ho, Wo) NCHW, channels = [real_result, imag_result].
    """
    B, C2, H, W = x.shape
    w_rr, w_ri, w_ir, w_ii = (params[k] for k in ("w_rr", "w_ri", "w_ir", "w_ii"))
    b_rr, b_ri, b_ir, b_ii = (params[k] for k in ("b_rr", "b_ri", "b_ir", "b_ii"))
    Cout, Cin, kh, kw = w_rr.shape
    assert C2 == 2 * Cin

    Hp, Wp = H + 2 * padding, W + 2 * padding
    Ho = (Hp - kh) // stride + 1
    Wo = (Wp - kw) // stride + 1
    S = Hp * Wp                                  # flat padded spatial size
    max_off = (kh - 1) * Wp + (kw - 1)           # largest tap shift
    LQ = _round_up(S, 128)                       # kernel output width (lane-dense)
    L = _round_up(LQ + max_off, 128)             # kernel input width (shift room)
    OC2 = 2 * Cout
    C2p = _round_up(C2, 8)                       # sublane-align contraction dim
    OC2p = _round_up(OC2, 8)                     # sublane-align output channels

    # Input prep (tiny, NO NCHW<->NHWC transpose): spatial zero-pad, flatten
    # (Hp, Wp) onto the lane dim, zero-pad lanes to L and channels to C2p.
    xp = jnp.pad(x, ((0, 0), (0, 0), (padding, padding), (padding, padding)))
    x_flat = jnp.pad(xp.reshape(B, C2, S), ((0, 0), (0, C2p - C2), (0, L - S)))

    # Fused complex weights, one (OC2, C2) matrix per kernel tap:
    #   [real_out]   [ w_rr  -w_ii ] [real_in]
    #   [imag_out] = [ w_ri   w_ir ] [imag_in]
    w_top = jnp.concatenate([w_rr, -w_ii], axis=1)      # (Cout, 2*Cin, kh, kw)
    w_bot = jnp.concatenate([w_ri, w_ir], axis=1)
    w_full = jnp.concatenate([w_top, w_bot], axis=0)    # (OC2, 2*Cin, kh, kw)
    w_taps = jnp.transpose(w_full, (2, 3, 0, 1)).reshape(kh * kw, OC2, C2)
    w_taps = jnp.pad(w_taps, ((0, 0), (0, OC2p - OC2), (0, C2p - C2)))
    b_fused = jnp.concatenate([b_rr - b_ii, b_ri + b_ir])
    b_fused = jnp.pad(b_fused, (0, OC2p - OC2)).reshape(OC2p, 1)

    kernel = functools.partial(
        _fused_complex_conv_kernel, kh=kh, kw=kw, wp=Wp, lq=LQ)

    y_flat = pl.pallas_call(
        kernel,
        out_shape=jax.ShapeDtypeStruct((B, OC2p, LQ), jnp.float32),
        grid_spec=pltpu.PrefetchScalarGridSpec(
            num_scalar_prefetch=0,
            grid=(1,),                           # single step: v5e/v6e-friendly
            in_specs=[
                pl.BlockSpec((B, C2p, L), lambda i: (0, 0, 0)),
                pl.BlockSpec((kh * kw, OC2p, C2p), lambda i: (0, 0, 0)),
                pl.BlockSpec((OC2p, 1), lambda i: (0, 0)),
            ],
            out_specs=pl.BlockSpec((B, OC2p, LQ), lambda i: (0, 0, 0)),
        ),
        compiler_params=pltpu.CompilerParams(
            dimension_semantics=("arbitrary",)),
    )(x_flat, w_taps, b_fused)

    # y_flat[b, o, q] is the conv output at flat padded coord q = r*Wp + c; the
    # valid output pixel (ho, wo) sits at (r, c) = (ho*stride, wo*stride).
    y = y_flat[:, :OC2, :S].reshape(B, OC2, Hp, Wp)
    y = y[:, :, :(Ho - 1) * stride + 1:stride, :(Wo - 1) * stride + 1:stride]
    return y


# ------------------------------ Reference ------------------------------------
def _conv_ref(x, w, b, stride, padding):
    y = jax.lax.conv_general_dilated(
        x, w, (stride, stride),
        [(padding, padding), (padding, padding)],
        dimension_numbers=("NCHW", "OIHW", "NCHW"),
    )
    return y + b[None, :, None, None]


def complex_conv2d_ref(x, params, *, stride=1, padding=0):
    Cin = x.shape[1] // 2
    real, imag = x[:, :Cin], x[:, Cin:]
    real_res = (_conv_ref(real, params["w_rr"], params["b_rr"], stride, padding)
                - _conv_ref(imag, params["w_ii"], params["b_ii"], stride, padding))
    imag_res = (_conv_ref(real, params["w_ri"], params["b_ri"], stride, padding)
                + _conv_ref(imag, params["w_ir"], params["b_ir"], stride, padding))
    return jnp.concatenate([real_res, imag_res], axis=1)


# --------------------------------- Main ---------------------------------------
if __name__ == "__main__":
    # Small config consistent with the module (conv1-style 3x3, padding=1):
    # input x: (B=2, 2*Cin=4, 16, 16), Cout=4 -> output (2, 8, 16, 16).
    B, Cin, Cout, K, H, W = 2, 2, 4, 3, 16, 16
    stride, padding = 1, 1

    key = jax.random.PRNGKey(0)
    keys = jax.random.split(key, 9)
    x = jax.random.normal(keys[0], (B, 2 * Cin, H, W), jnp.float32)

    def winit(k):
        return jax.random.normal(k, (Cout, Cin, K, K), jnp.float32) * 0.1

    params = {
        "w_rr": winit(keys[1]), "w_ri": winit(keys[2]),
        "w_ir": winit(keys[3]), "w_ii": winit(keys[4]),
        "b_rr": jax.random.normal(keys[5], (Cout,), jnp.float32) * 0.1,
        "b_ri": jax.random.normal(keys[6], (Cout,), jnp.float32) * 0.1,
        "b_ir": jax.random.normal(keys[7], (Cout,), jnp.float32) * 0.1,
        "b_ii": jax.random.normal(keys[8], (Cout,), jnp.float32) * 0.1,
    }

    fn = jax.jit(functools.partial(complex_conv2d, stride=stride, padding=padding))
    out = jax.block_until_ready(fn(x, params))

    ref = complex_conv2d_ref(x, params, stride=stride, padding=padding)
    assert out.shape == (B, 2 * Cout, H, W), out.shape
    max_err = float(jnp.max(jnp.abs(out - ref)))
    assert jnp.allclose(out, ref, atol=1e-4, rtol=1e-4), max_err
    print("KERNEL_OK")
</pallas_src>

<mosaic_0001>
module attributes {stable_mosaic.version = 11 : i64} {
  func.func @_fused_complex_conv_kernel(%arg0: i32, %arg1: memref<2x8x512xf32, #tpu.memory_space<vmem>>, %arg2: memref<9x8x8xf32, #tpu.memory_space<vmem>>, %arg3: memref<8x1xf32, #tpu.memory_space<vmem>>, %arg4: memref<2x8x384xf32, #tpu.memory_space<vmem>>) attributes {dimension_semantics = [#tpu.dimension_semantics<arbitrary>], iteration_bounds = array<i64: 1>, scalar_prefetch = 0 : i64, scratch_operands = 0 : i64, tpu.core_type = #tpu.core_type<tc>, window_params = [{pipeline_mode = #tpu.pipeline_mode<synchronous>, transform_indices = @transform_0, window_bounds = array<i64: 2, 8, 512>}, {pipeline_mode = #tpu.pipeline_mode<synchronous>, transform_indices = @transform_1, window_bounds = array<i64: 9, 8, 8>}, {pipeline_mode = #tpu.pipeline_mode<synchronous>, transform_indices = @transform_2, window_bounds = array<i64: 8, 1>}, {pipeline_mode = #tpu.pipeline_mode<synchronous>, transform_indices = @transform_3, window_bounds = array<i64: 2, 8, 384>}]} {
    %c0 = arith.constant 0 : index
    %c0_0 = arith.constant 0 : index
    %c0_1 = arith.constant 0 : index
    %0 = vector.load %arg1[%c0, %c0_0, %c0_1] : memref<2x8x512xf32, #tpu.memory_space<vmem>>, vector<1x8x512xf32>
    %1 = vector.shape_cast %0 : vector<1x8x512xf32> to vector<8x512xf32>
    %c0_2 = arith.constant 0 : index
    %c0_3 = arith.constant 0 : index
    %2 = vector.load %arg3[%c0_2, %c0_3] : memref<8x1xf32, #tpu.memory_space<vmem>>, vector<8x1xf32>
    %3 = vector.shape_cast %2 : vector<8x1xf32> to vector<8x1xf32>
    %4 = vector.broadcast %3 : vector<8x1xf32> to vector<8x384xf32>
    %5 = vector.extract_strided_slice %1 {offsets = [0, 0], sizes = [8, 384], strides = [1, 1]} : vector<8x512xf32> to vector<8x384xf32>
    %c0_4 = arith.constant 0 : index
    %c0_5 = arith.constant 0 : index
    %c0_6 = arith.constant 0 : index
    %6 = vector.load %arg2[%c0_4, %c0_5, %c0_6] : memref<9x8x8xf32, #tpu.memory_space<vmem>>, vector<1x8x8xf32>
    %7 = vector.shape_cast %6 : vector<1x8x8xf32> to vector<8x8xf32>
    %cst = arith.constant dense<0.000000e+00> : vector<8x384xf32>
    %8 = tpu.matmul %7, %5, %cst {dimension_numbers = #tpu.dot_dimension_numbers<[1], [0], [0], [1], [0, 0, 1, 1], [], []>} : vector<8x8xf32>, vector<8x384xf32>, vector<8x384xf32> -> vector<8x384xf32>
    %9 = arith.addf %4, %8 : vector<8x384xf32>
    %10 = vector.extract_strided_slice %1 {offsets = [0, 1], sizes = [8, 384], strides = [1, 1]} : vector<8x512xf32> to vector<8x384xf32>
    %c1 = arith.constant 1 : index
    %c0_7 = arith.constant 0 : index
    %c0_8 = arith.constant 0 : index
    %11 = vector.load %arg2[%c1, %c0_7, %c0_8] : memref<9x8x8xf32, #tpu.memory_space<vmem>>, vector<1x8x8xf32>
    %12 = vector.shape_cast %11 : vector<1x8x8xf32> to vector<8x8xf32>
    %cst_9 = arith.constant dense<0.000000e+00> : vector<8x384xf32>
    %13 = tpu.matmul %12, %10, %cst_9 {dimension_numbers = #tpu.dot_dimension_numbers<[1], [0], [0], [1], [0, 0, 1, 1], [], []>} : vector<8x8xf32>, vector<8x384xf32>, vector<8x384xf32> -> vector<8x384xf32>
    %14 = arith.addf %9, %13 : vector<8x384xf32>
    %15 = vector.extract_strided_slice %1 {offsets = [0, 2], sizes = [8, 384], strides = [1, 1]} : vector<8x512xf32> to vector<8x384xf32>
    %c2 = arith.constant 2 : index
    %c0_10 = arith.constant 0 : index
    %c0_11 = arith.constant 0 : index
    %16 = vector.load %arg2[%c2, %c0_10, %c0_11] : memref<9x8x8xf32, #tpu.memory_space<vmem>>, vector<1x8x8xf32>
    %17 = vector.shape_cast %16 : vector<1x8x8xf32> to vector<8x8xf32>
    %cst_12 = arith.constant dense<0.000000e+00> : vector<8x384xf32>
    %18 = tpu.matmul %17, %15, %cst_12 {dimension_numbers = #tpu.dot_dimension_numbers<[1], [0], [0], [1], [0, 0, 1, 1], [], []>} : vector<8x8xf32>, vector<8x384xf32>, vector<8x384xf32> -> vector<8x384xf32>
    %19 = arith.addf %14, %18 : vector<8x384xf32>
    %20 = vector.extract_strided_slice %1 {offsets = [0, 18], sizes = [8, 384], strides = [1, 1]} : vector<8x512xf32> to vector<8x384xf32>
    %c3 = arith.constant 3 : index
    %c0_13 = arith.constant 0 : index
    %c0_14 = arith.constant 0 : index
    %21 = vector.load %arg2[%c3, %c0_13, %c0_14] : memref<9x8x8xf32, #tpu.memory_space<vmem>>, vector<1x8x8xf32>
    %22 = vector.shape_cast %21 : vector<1x8x8xf32> to vector<8x8xf32>
    %cst_15 = arith.constant dense<0.000000e+00> : vector<8x384xf32>
    %23 = tpu.matmul %22, %20, %cst_15 {dimension_numbers = #tpu.dot_dimension_numbers<[1], [0], [0], [1], [0, 0, 1, 1], [], []>} : vector<8x8xf32>, vector<8x384xf32>, vector<8x384xf32> -> vector<8x384xf32>
    %24 = arith.addf %19, %23 : vector<8x384xf32>
    %25 = vector.extract_strided_slice %1 {offsets = [0, 19], sizes = [8, 384], strides = [1, 1]} : vector<8x512xf32> to vector<8x384xf32>
    %c4 = arith.constant 4 : index
    %c0_16 = arith.constant 0 : index
    %c0_17 = arith.constant 0 : index
    %26 = vector.load %arg2[%c4, %c0_16, %c0_17] : memref<9x8x8xf32, #tpu.memory_space<vmem>>, vector<1x8x8xf32>
    %27 = vector.shape_cast %26 : vector<1x8x8xf32> to vector<8x8xf32>
    %cst_18 = arith.constant dense<0.000000e+00> : vector<8x384xf32>
    %28 = tpu.matmul %27, %25, %cst_18 {dimension_numbers = #tpu.dot_dimension_numbers<[1], [0], [0], [1], [0, 0, 1, 1], [], []>} : vector<8x8xf32>, vector<8x384xf32>, vector<8x384xf32> -> vector<8x384xf32>
    %29 = arith.addf %24, %28 : vector<8x384xf32>
    %30 = vector.extract_strided_slice %1 {offsets = [0, 20], sizes = [8, 384], strides = [1, 1]} : vector<8x512xf32> to vector<8x384xf32>
    %c5 = arith.constant 5 : index
    %c0_19 = arith.constant 0 : index
    %c0_20 = arith.constant 0 : index
    %31 = vector.load %arg2[%c5, %c0_19, %c0_20] : memref<9x8x8xf32, #tpu.memory_space<vmem>>, vector<1x8x8xf32>
    %32 = vector.shape_cast %31 : vector<1x8x8xf32> to vector<8x8xf32>
    %cst_21 = arith.constant dense<0.000000e+00> : vector<8x384xf32>
    %33 = tpu.matmul %32, %30, %cst_21 {dimension_numbers = #tpu.dot_dimension_numbers<[1], [0], [0], [1], [0, 0, 1, 1], [], []>} : vector<8x8xf32>, vector<8x384xf32>, vector<8x384xf32> -> vector<8x384xf32>
    %34 = arith.addf %29, %33 : vector<8x384xf32>
    %35 = vector.extract_strided_slice %1 {offsets = [0, 36], sizes = [8, 384], strides = [1, 1]} : vector<8x512xf32> to vector<8x384xf32>
    %c6 = arith.constant 6 : index
    %c0_22 = arith.constant 0 : index
    %c0_23 = arith.constant 0 : index
    %36 = vector.load %arg2[%c6, %c0_22, %c0_23] : memref<9x8x8xf32, #tpu.memory_space<vmem>>, vector<1x8x8xf32>
    %37 = vector.shape_cast %36 : vector<1x8x8xf32> to vector<8x8xf32>
    %cst_24 = arith.constant dense<0.000000e+00> : vector<8x384xf32>
    %38 = tpu.matmul %37, %35, %cst_24 {dimension_numbers = #tpu.dot_dimension_numbers<[1], [0], [0], [1], [0, 0, 1, 1], [], []>} : vector<8x8xf32>, vector<8x384xf32>, vector<8x384xf32> -> vector<8x384xf32>
    %39 = arith.addf %34, %38 : vector<8x384xf32>
    %40 = vector.extract_strided_slice %1 {offsets = [0, 37], sizes = [8, 384], strides = [1, 1]} : vector<8x512xf32> to vector<8x384xf32>
    %c7 = arith.constant 7 : index
    %c0_25 = arith.constant 0 : index
    %c0_26 = arith.constant 0 : index
    %41 = vector.load %arg2[%c7, %c0_25, %c0_26] : memref<9x8x8xf32, #tpu.memory_space<vmem>>, vector<1x8x8xf32>
    %42 = vector.shape_cast %41 : vector<1x8x8xf32> to vector<8x8xf32>
    %cst_27 = arith.constant dense<0.000000e+00> : vector<8x384xf32>
    %43 = tpu.matmul %42, %40, %cst_27 {dimension_numbers = #tpu.dot_dimension_numbers<[1], [0], [0], [1], [0, 0, 1, 1], [], []>} : vector<8x8xf32>, vector<8x384xf32>, vector<8x384xf32> -> vector<8x384xf32>
    %44 = arith.addf %39, %43 : vector<8x384xf32>
    %45 = vector.extract_strided_slice %1 {offsets = [0, 38], sizes = [8, 384], strides = [1, 1]} : vector<8x512xf32> to vector<8x384xf32>
    %c8 = arith.constant 8 : index
    %c0_28 = arith.constant 0 : index
    %c0_29 = arith.constant 0 : index
    %46 = vector.load %arg2[%c8, %c0_28, %c0_29] : memref<9x8x8xf32, #tpu.memory_space<vmem>>, vector<1x8x8xf32>
    %47 = vector.shape_cast %46 : vector<1x8x8xf32> to vector<8x8xf32>
    %cst_30 = arith.constant dense<0.000000e+00> : vector<8x384xf32>
    %48 = tpu.matmul %47, %45, %cst_30 {dimension_numbers = #tpu.dot_dimension_numbers<[1], [0], [0], [1], [0, 0, 1, 1], [], []>} : vector<8x8xf32>, vector<8x384xf32>, vector<8x384xf32> -> vector<8x384xf32>
    %49 = arith.addf %44, %48 : vector<8x384xf32>
    %c0_31 = arith.constant 0 : index
    %c0_32 = arith.constant 0 : index
    %c0_33 = arith.constant 0 : index
    %50 = vector.load %arg4[%c0_31, %c0_32, %c0_33] : memref<2x8x384xf32, #tpu.memory_space<vmem>>, vector<1x8x384xf32>
    %51 = vector.shape_cast %50 : vector<1x8x384xf32> to vector<8x384xf32>
    %52 = vector.shape_cast %49 : vector<8x384xf32> to vector<1x8x384xf32>
    tpu.vector_store %arg4[%c0_31, %c0_32, %c0_33], %52 {strides = array<i32>} : memref<2x8x384xf32, #tpu.memory_space<vmem>>, vector<1x8x384xf32>,
    %c1_34 = arith.constant 1 : index
    %c0_35 = arith.constant 0 : index
    %c0_36 = arith.constant 0 : index
    %53 = vector.load %arg1[%c1_34, %c0_35, %c0_36] : memref<2x8x512xf32, #tpu.memory_space<vmem>>, vector<1x8x512xf32>
    %54 = vector.shape_cast %53 : vector<1x8x512xf32> to vector<8x512xf32>
    %c0_37 = arith.constant 0 : index
    %c0_38 = arith.constant 0 : index
    %55 = vector.load %arg3[%c0_37, %c0_38] : memref<8x1xf32, #tpu.memory_space<vmem>>, vector<8x1xf32>
    %56 = vector.shape_cast %55 : vector<8x1xf32> to vector<8x1xf32>
    %57 = vector.broadcast %56 : vector<8x1xf32> to vector<8x384xf32>
    %58 = vector.extract_strided_slice %54 {offsets = [0, 0], sizes = [8, 384], strides = [1, 1]} : vector<8x512xf32> to vector<8x384xf32>
    %c0_39 = arith.constant 0 : index
    %c0_40 = arith.constant 0 : index
    %c0_41 = arith.constant 0 : index
    %59 = vector.load %arg2[%c0_39, %c0_40, %c0_41] : memref<9x8x8xf32, #tpu.memory_space<vmem>>, vector<1x8x8xf32>
    %60 = vector.shape_cast %59 : vector<1x8x8xf32> to vector<8x8xf32>
    %cst_42 = arith.constant dense<0.000000e+00> : vector<8x384xf32>
    %61 = tpu.matmul %60, %58, %cst_42 {dimension_numbers = #tpu.dot_dimension_numbers<[1], [0], [0], [1], [0, 0, 1, 1], [], []>} : vector<8x8xf32>, vector<8x384xf32>, vector<8x384xf32> -> vector<8x384xf32>
    %62 = arith.addf %57, %61 : vector<8x384xf32>
    %63 = vector.extract_strided_slice %54 {offsets = [0, 1], sizes = [8, 384], strides = [1, 1]} : vector<8x512xf32> to vector<8x384xf32>
    %c1_43 = arith.constant 1 : index
    %c0_44 = arith.constant 0 : index
    %c0_45 = arith.constant 0 : index
    %64 = vector.load %arg2[%c1_43, %c0_44, %c0_45] : memref<9x8x8xf32, #tpu.memory_space<vmem>>, vector<1x8x8xf32>
    %65 = vector.shape_cast %64 : vector<1x8x8xf32> to vector<8x8xf32>
    %cst_46 = arith.constant dense<0.000000e+00> : vector<8x384xf32>
    %66 = tpu.matmul %65, %63, %cst_46 {dimension_numbers = #tpu.dot_dimension_numbers<[1], [0], [0], [1], [0, 0, 1, 1], [], []>} : vector<8x8xf32>, vector<8x384xf32>, vector<8x384xf32> -> vector<8x384xf32>
    %67 = arith.addf %62, %66 : vector<8x384xf32>
    %68 = vector.extract_strided_slice %54 {offsets = [0, 2], sizes = [8, 384], strides = [1, 1]} : vector<8x512xf32> to vector<8x384xf32>
    %c2_47 = arith.constant 2 : index
    %c0_48 = arith.constant 0 : index
    %c0_49 = arith.constant 0 : index
    %69 = vector.load %arg2[%c2_47, %c0_48, %c0_49] : memref<9x8x8xf32, #tpu.memory_space<vmem>>, vector<1x8x8xf32>
    %70 = vector.shape_cast %69 : vector<1x8x8xf32> to vector<8x8xf32>
    %cst_50 = arith.constant dense<0.000000e+00> : vector<8x384xf32>
    %71 = tpu.matmul %70, %68, %cst_50 {dimension_numbers = #tpu.dot_dimension_numbers<[1], [0], [0], [1], [0, 0, 1, 1], [], []>} : vector<8x8xf32>, vector<8x384xf32>, vector<8x384xf32> -> vector<8x384xf32>
    %72 = arith.addf %67, %71 : vector<8x384xf32>
    %73 = vector.extract_strided_slice %54 {offsets = [0, 18], sizes = [8, 384], strides = [1, 1]} : vector<8x512xf32> to vector<8x384xf32>
    %c3_51 = arith.constant 3 : index
    %c0_52 = arith.constant 0 : index
    %c0_53 = arith.constant 0 : index
    %74 = vector.load %arg2[%c3_51, %c0_52, %c0_53] : memref<9x8x8xf32, #tpu.memory_space<vmem>>, vector<1x8x8xf32>
    %75 = vector.shape_cast %74 : vector<1x8x8xf32> to vector<8x8xf32>
    %cst_54 = arith.constant dense<0.000000e+00> : vector<8x384xf32>
    %76 = tpu.matmul %75, %73, %cst_54 {dimension_numbers = #tpu.dot_dimension_numbers<[1], [0], [0], [1], [0, 0, 1, 1], [], []>} : vector<8x8xf32>, vector<8x384xf32>, vector<8x384xf32> -> vector<8x384xf32>
    %77 = arith.addf %72, %76 : vector<8x384xf32>
    %78 = vector.extract_strided_slice %54 {offsets = [0, 19], sizes = [8, 384], strides = [1, 1]} : vector<8x512xf32> to vector<8x384xf32>
    %c4_55 = arith.constant 4 : index
    %c0_56 = arith.constant 0 : index
    %c0_57 = arith.constant 0 : index
    %79 = vector.load %arg2[%c4_55, %c0_56, %c0_57] : memref<9x8x8xf32, #tpu.memory_space<vmem>>, vector<1x8x8xf32>
    %80 = vector.shape_cast %79 : vector<1x8x8xf32> to vector<8x8xf32>
    %cst_58 = arith.constant dense<0.000000e+00> : vector<8x384xf32>
    %81 = tpu.matmul %80, %78, %cst_58 {dimension_numbers = #tpu.dot_dimension_numbers<[1], [0], [0], [1], [0, 0, 1, 1], [], []>} : vector<8x8xf32>, vector<8x384xf32>, vector<8x384xf32> -> vector<8x384xf32>
    %82 = arith.addf %77, %81 : vector<8x384xf32>
    %83 = vector.extract_strided_slice %54 {offsets = [0, 20], sizes = [8, 384], strides = [1, 1]} : vector<8x512xf32> to vector<8x384xf32>
    %c5_59 = arith.constant 5 : index
    %c0_60 = arith.constant 0 : index
    %c0_61 = arith.constant 0 : index
    %84 = vector.load %arg2[%c5_59, %c0_60, %c0_61] : memref<9x8x8xf32, #tpu.memory_space<vmem>>, vector<1x8x8xf32>
    %85 = vector.shape_cast %84 : vector<1x8x8xf32> to vector<8x8xf32>
    %cst_62 = arith.constant dense<0.000000e+00> : vector<8x384xf32>
    %86 = tpu.matmul %85, %83, %cst_62 {dimension_numbers = #tpu.dot_dimension_numbers<[1], [0], [0], [1], [0, 0, 1, 1], [], []>} : vector<8x8xf32>, vector<8x384xf32>, vector<8x384xf32> -> vector<8x384xf32>
    %87 = arith.addf %82, %86 : vector<8x384xf32>
    %88 = vector.extract_strided_slice %54 {offsets = [0, 36], sizes = [8, 384], strides = [1, 1]} : vector<8x512xf32> to vector<8x384xf32>
    %c6_63 = arith.constant 6 : index
    %c0_64 = arith.constant 0 : index
    %c0_65 = arith.constant 0 : index
    %89 = vector.load %arg2[%c6_63, %c0_64, %c0_65] : memref<9x8x8xf32, #tpu.memory_space<vmem>>, vector<1x8x8xf32>
    %90 = vector.shape_cast %89 : vector<1x8x8xf32> to vector<8x8xf32>
    %cst_66 = arith.constant dense<0.000000e+00> : vector<8x384xf32>
    %91 = tpu.matmul %90, %88, %cst_66 {dimension_numbers = #tpu.dot_dimension_numbers<[1], [0], [0], [1], [0, 0, 1, 1], [], []>} : vector<8x8xf32>, vector<8x384xf32>, vector<8x384xf32> -> vector<8x384xf32>
    %92 = arith.addf %87, %91 : vector<8x384xf32>
    %93 = vector.extract_strided_slice %54 {offsets = [0, 37], sizes = [8, 384], strides = [1, 1]} : vector<8x512xf32> to vector<8x384xf32>
    %c7_67 = arith.constant 7 : index
    %c0_68 = arith.constant 0 : index
    %c0_69 = arith.constant 0 : index
    %94 = vector.load %arg2[%c7_67, %c0_68, %c0_69] : memref<9x8x8xf32, #tpu.memory_space<vmem>>, vector<1x8x8xf32>
    %95 = vector.shape_cast %94 : vector<1x8x8xf32> to vector<8x8xf32>
    %cst_70 = arith.constant dense<0.000000e+00> : vector<8x384xf32>
    %96 = tpu.matmul %95, %93, %cst_70 {dimension_numbers = #tpu.dot_dimension_numbers<[1], [0], [0], [1], [0, 0, 1, 1], [], []>} : vector<8x8xf32>, vector<8x384xf32>, vector<8x384xf32> -> vector<8x384xf32>
    %97 = arith.addf %92, %96 : vector<8x384xf32>
    %98 = vector.extract_strided_slice %54 {offsets = [0, 38], sizes = [8, 384], strides = [1, 1]} : vector<8x512xf32> to vector<8x384xf32>
    %c8_71 = arith.constant 8 : index
    %c0_72 = arith.constant 0 : index
    %c0_73 = arith.constant 0 : index
    %99 = vector.load %arg2[%c8_71, %c0_72, %c0_73] : memref<9x8x8xf32, #tpu.memory_space<vmem>>, vector<1x8x8xf32>
    %100 = vector.shape_cast %99 : vector<1x8x8xf32> to vector<8x8xf32>
    %cst_74 = arith.constant dense<0.000000e+00> : vector<8x384xf32>
    %101 = tpu.matmul %100, %98, %cst_74 {dimension_numbers = #tpu.dot_dimension_numbers<[1], [0], [0], [1], [0, 0, 1, 1], [], []>} : vector<8x8xf32>, vector<8x384xf32>, vector<8x384xf32> -> vector<8x384xf32>
    %102 = arith.addf %97, %101 : vector<8x384xf32>
    %c1_75 = arith.constant 1 : index
    %c0_76 = arith.constant 0 : index
    %c0_77 = arith.constant 0 : index
    %103 = vector.load %arg4[%c1_75, %c0_76, %c0_77] : memref<2x8x384xf32, #tpu.memory_space<vmem>>, vector<1x8x384xf32>
    %104 = vector.shape_cast %103 : vector<1x8x384xf32> to vector<8x384xf32>
    %105 = vector.shape_cast %102 : vector<8x384xf32> to vector<1x8x384xf32>
    tpu.vector_store %arg4[%c1_75, %c0_76, %c0_77], %105 {strides = array<i32>} : memref<2x8x384xf32, #tpu.memory_space<vmem>>, vector<1x8x384xf32>,
    return
  }
  func.func @transform_0(%arg0: i32) -> (i32, i32, i32) {
    %c0_i32 = arith.constant 0 : i32
    %c0_i32_0 = arith.constant 0 : i32
    %c0_i32_1 = arith.constant 0 : i32
    %c0_i32_2 = arith.constant 0 : i32
    return %c0_i32, %c0_i32_0, %c0_i32_1 : i32, i32, i32
  }
  func.func @transform_1(%arg0: i32) -> (i32, i32, i32) {
    %c0_i32 = arith.constant 0 : i32
    %c0_i32_0 = arith.constant 0 : i32
    %c0_i32_1 = arith.constant 0 : i32
    %c0_i32_2 = arith.constant 0 : i32
    return %c0_i32, %c0_i32_0, %c0_i32_1 : i32, i32, i32
  }
  func.func @transform_2(%arg0: i32) -> (i32, i32) {
    %c0_i32 = arith.constant 0 : i32
    %c0_i32_0 = arith.constant 0 : i32
    %c0_i32_1 = arith.constant 0 : i32
    return %c0_i32, %c0_i32_0 : i32, i32
  }
  func.func @transform_3(%arg0: i32) -> (i32, i32, i32) {
    %c0_i32 = arith.constant 0 : i32
    %c0_i32_0 = arith.constant 0 : i32
    %c0_i32_1 = arith.constant 0 : i32
    %c0_i32_2 = arith.constant 0 : i32
    return %c0_i32, %c0_i32_0, %c0_i32_1 : i32, i32, i32
  }
}

</mosaic_0001>

<bundles_post_ra>
// kernel: sub.1
= control target key start
LH: loop header
LB: loop body
LE: loop exit
PB: predicated region body
PF: predicated region fallthrough
CT: control target
= control target key end

     0   :  { %3 = vsyncpa [#allocation1], 0  ;;  %s126_s0 = inlined_call_operand.hbm [shape: f32[4], index: 0, kind: input, shape index: {}]   ;;  %s127_s1 = inlined_call_operand.hbm [shape: f32[4], index: 1, kind: input, shape index: {}]   ;;  %s128_s2 = inlined_call_operand.vmem [shape: f32[4], index: 2, kind: output, shape index: {}]  }
   0x1   :  { %4 = vsyncpa [#allocation3], 0  ;;  %s82_s9 = smov [#allocation0]   ;;  %s83_s11 = smov [#allocation2]  }
   0x2   :  { %s9_s10 = sshll.u32 %s82_s9, 4  ;;  %s17_s12 = sshll.u32 %s83_s11, 4  ;;  %s10_s10 = int_to_ptr.vmem [resolvable:$true] %s9_s10  ;;  %s18_s12 = int_to_ptr.vmem [resolvable:$true] %s17_s12 }
   0x3   :  { %s34_s15 = scalar_lea.hbm %s126_s0, 16 }
   0x4   :  { %p35_p0 = scmp.ne.s32.totalorder %s126_s0, %s34_s15  ;;  %p38_p1 = scmp.lt.u32.totalorder %s34_s15, %s126_s0 }
   0x6   :  { %p40_p2 = pnand %p38_p1, %p35_p0 }
   0x8   :  { %43 = shalt.err (!%p40_p2)
}
   0x9   :  { %s44_s20 = scalar_lea.vmem %s10_s10, 16  ;;  %s48_s21 = scalar_lea.vmem %s10_s10, 32 }
   0xa   :  { %p45_p3 = scmp.ne.s32.totalorder %s10_s10, %s44_s20  ;;  %p49_p4 = scmp.lt.s32.totalorder %s10_s10, %s10_s10 }
   0xb   :  { %p50_p5 = scmp.lt.s32.totalorder %s48_s21, %s44_s20 }
   0xd   :  { %p51_p6 = por %p50_p5, %p49_p4 }
   0xf   :  { %p52_p7 = pnand %p51_p6, %p45_p3 }
  0x11   :  { %55 = shalt.err (!%p52_p7)
}
  0x12   :  { %12 = dma.hbm_to_vmem [thread:$0]  %s126_s0, 16, %s10_s10, [#allocation1]  }
  0x13   :  { %s56_s25 = scalar_lea.hbm %s127_s1, 16 }
  0x14   :  { %p57_p8 = scmp.ne.s32.totalorder %s127_s1, %s56_s25  ;;  %p60_p9 = scmp.lt.u32.totalorder %s56_s25, %s127_s1 }
  0x16   :  { %p62_p10 = pnand %p60_p9, %p57_p8 }
  0x18   :  { %65 = shalt.err (!%p62_p10)
}
  0x19   :  { %s66_s30 = scalar_lea.vmem %s18_s12, 16  ;;  %s70_s3 = scalar_lea.vmem %s18_s12, 32 }
  0x1a   :  { %p67_p11 = scmp.ne.s32.totalorder %s18_s12, %s66_s30  ;;  %p71_p12 = scmp.lt.s32.totalorder %s18_s12, %s18_s12 }
  0x1b   :  { %p72_p13 = scmp.lt.s32.totalorder %s70_s3, %s66_s30 }
  0x1d   :  { %p73_p0 = por %p72_p13, %p71_p12 }
  0x1f   :  { %p74_p1 = pnand %p73_p0, %p67_p11 }
  0x21   :  { %77 = shalt.err (!%p74_p1)
}
  0x22   :  { %20 = dma.hbm_to_vmem [thread:$0]  %s127_s1, 16, %s18_s12, [#allocation3]  }
  0x23   :  { %78 = dma.done.wait [#allocation1], 16  }
  0x24   :  { %79 = vsyncadd [#allocation1], 4294967280 }
  0x25   :  { %80 = dma.done.wait [#allocation3], 16  }
  0x26   :  { %81 = vsyncadd [#allocation3], 4294967280  ;;  %v23_v0 = vld [vmem:[#allocation0] sm:$0x1]  ;;  %v24_v1 = vld [vmem:[#allocation2] sm:$0x1] }
  0x27   :  { %v27_v2 = vsub.f32 %v23_v0, %v24_v1 }
  0x29   :  { %29 = vst [vmem:[%s128_s2] sm:$0x1] %v27_v2 }
  0x2a   :  { %30 = vsyncpa [#allocation1], 1 }
  0x2b   :  { %31 = vsyncpa [#allocation3], 1 }

// kernel: neg.1
= control target key start
LH: loop header
LB: loop body
LE: loop exit
PB: predicated region body
PF: predicated region fallthrough
CT: control target
= control target key end

     0   :  { %s152_s0 = inlined_call_operand.vmem [shape: f32[4,2,3,3], index: 0, kind: input, shape index: {}]   ;;  %s153_s1 = inlined_call_operand.vmem [shape: f32[4,2,3,3], index: 1, kind: output, shape index: {}]  }
   0x1   :  { %v2_v0 = vld [vmem:[%s152_s0] sm:$0x3]  ;;  %v72_v1 = vld [vmem:[%s152_s0 + $0x6] sm:$0x3]  ;;  %v74_v2 = vld [vmem:[%s152_s0 + $0xc] sm:$0x3] }
   0x2   :  { %v5_v3 = vxor.u32 2147483648, %v2_v0  ;;  %v12_v4 = vxor.u32 2147483648, %v72_v1  ;;  %v20_v5 = vxor.u32 2147483648, %v74_v2  ;;  %v76_v6 = vld [vmem:[%s152_s0 + $0x2] sm:$0x3] }
   0x3   :  { %v28_v7 = vxor.u32 2147483648, %v76_v6  ;;  %v78_v8 = vld [vmem:[%s152_s0 + $0x8] sm:$0x3]  ;;  %v80_v9 = vld [vmem:[%s152_s0 + $0xe] sm:$0x3] }
   0x4   :  { %7 = vst [vmem:[%s153_s1] sm:$0x3] %v5_v3  ;;  %73 = vst [vmem:[%s153_s1 + $0x6] sm:$0x3] %v12_v4  ;;  %v36_v10 = vxor.u32 2147483648, %v78_v8  ;;  %v44_v11 = vxor.u32 2147483648, %v80_v9 }
   0x5   :  { %75 = vst [vmem:[%s153_s1 + $0xc] sm:$0x3] %v20_v5  ;;  %v82_v12 = vld [vmem:[%s152_s0 + $0x4] sm:$0x3]  ;;  %v84_v13 = vld [vmem:[%s152_s0 + $0xa] sm:$0x3] }
   0x6   :  { %77 = vst [vmem:[%s153_s1 + $0x2] sm:$0x3] %v28_v7  ;;  %v52_v14 = vxor.u32 2147483648, %v82_v12  ;;  %v60_v15 = vxor.u32 2147483648, %v84_v13  ;;  %v86_v16 = vld [vmem:[%s152_s0 + $0x10] sm:$0x3] }
   0x7   :  { %79 = vst [vmem:[%s153_s1 + $0x8] sm:$0x3] %v36_v10  ;;  %81 = vst [vmem:[%s153_s1 + $0xe] sm:$0x3] %v44_v11  ;;  %v68_v17 = vxor.u32 2147483648, %v86_v16 }
   0x8   :  { %83 = vst [vmem:[%s153_s1 + $0x4] sm:$0x3] %v52_v14  ;;  %85 = vst [vmem:[%s153_s1 + $0xa] sm:$0x3] %v60_v15 }
   0x9   :  { %87 = vst [vmem:[%s153_s1 + $0x10] sm:$0x3] %v68_v17 }

// kernel: complex_conv2d.1
= control target key start
LH: loop header
LB: loop body
LE: loop exit
PB: predicated region body
PF: predicated region fallthrough
CT: control target
= control target key end

     0   :  { %v3227_v2 = vmov 0.0   ;;  %vm3228_vm0 = vmmov 0   ;;  %s3229_s16 = smov 127   ;;  %vm25_vm1 = vcmask 64512   ;;  %s3230_s23 = smov 126   ;;  %vm187_vm2 = vcmask 1039360   ;;  %s3637_s0 = inlined_call_operand.vmem [shape: f32[2,8,512], index: 0, kind: input, shape index: {}]   ;;  %s3638_s1 = inlined_call_operand.vmem [shape: f32[9,8,8], index: 1, kind: input, shape index: {}]   ;;  %s3639_s2 = inlined_call_operand.vmem [shape: f32[8,1], index: 2, kind: input, shape index: {}]   ;;  %s3640_s3 = inlined_call_operand.vmem [shape: f32[2,8,384], index: 3, kind: output, shape index: {}]  }
   0x1   :  { %v15_v0 = vld [vmem:[%s3637_s0 + $0x8] sm:$0xff]  ;;  %v14_v1 = vld [vmem:[%s3637_s0] sm:$0xff]  ;;  %3054 = vmatprep.subr.mxu1 %v3227_v2  ;;  %3056 = vmatprep.mubr.msk.f32.mxu1 %vm3228_vm0, %v3227_v2  ;;  %v16_v3 = vld [vmem:[%s3637_s0 + $0x10] sm:$0xff]  ;;  %s3231_s24 = smov 110   ;;  %s3232_s25 = smov 109   ;;  %vm351_vm3 = vcmask 1031168  }
   0x2   :  { %181 = vrot.lane.b32.xlu0 %v15_v0, %s3229_s16  ;;  %179 = vrot.lane.b32.xlu1 %v14_v1, %s3229_s16  ;;  %v17_v4 = vld [vmem:[%s3637_s0 + $0x18] sm:$0xff]  ;;  %v3279_v5 = vld [vmem:[%s3638_s1] sm:$0xff]  ;;  %s3233_s26 = smov 108   ;;  %s3234_s27 = smov 92   ;;  %v3237_v23 = vmov 0   ;;  %vm515_vm4 = vcmask 900096  }
   0x3   :  { %29 = vmatprep.subr.mxu0 %v15_v0  ;;  %3055 = vmatpush3.msra.mxu1 %v16_v3  ;;  %s3235_s28 = smov 91   ;;  %s3236_s29 = smov 90   ;;  %v3322_v6 = vld [vmem:[%s3637_s0 + $0x28] sm:$0xff]  ;;  %v3327_v7 = vld [vmem:[%s3637_s0 + $0x30] sm:$0xff]  ;;  %v3336_v8 = vld [vmem:[%s3637_s0 + $0x20] sm:$0xff]  ;;  %vm679_vm5 = vcmask 891904  }
   0x4   :  { %93 = vmatprep.mubr.f32.mxu0 %v3227_v2  ;;  %30 = vmatpush1.msra.mxu0 %v14_v1  ;;  %v2988_v9 = vld [vmem:[%s3637_s0 + $0x38] sm:$0xff]  ;;  %v3391_v16 = vld [vmem:[%s3638_s1 + $0x8] sm:$0xff]  ;;  %v18_v24 = vld [vmem:[%s3639_s2] sm:$0xff]  ;;  %vm843_vm6 = vcmask 883712   ;;  %vm1007_vm7 = vcmask 752640   ;;  %vm1171_vm8 = vcmask 744448  }
   0x5   :  { %3057 = vmatmul.mubr.msk.f32.vlgmr.msra.gmra.mrb[0].mxu1 %vm25_vm1, %v3279_v5  ;;  %2959 = vmatmul.mubr.msk.f32.vlgmr.msra.gmra.mrb[0].mxu0 %vm25_vm1, %v3279_v5  ;;  %v3418_v27 = vld [vmem:[%s3638_s1 + $0x10] sm:$0xff]  ;;  %v3434_v35 = vld [vmem:[%s3638_s1 + $0x18] sm:$0xff]  ;;  %v3450_v43 = vld [vmem:[%s3638_s1 + $0x20] sm:$0xff]  ;;  %vm1335_vm9 = vcmask 736256  }
   0x6   :  { %183 = vrot.lane.b32.xlu0 %v16_v3, %s3229_s16  ;;  %185 = vrot.lane.b32.xlu1 %v17_v4, %s3229_s16  ;;  %v3466_v51 = vld [vmem:[%s3638_s1 + $0x28] sm:$0xff]  ;;  %v3482_v59 = vld [vmem:[%s3638_s1 + $0x30] sm:$0xff] }
   0x7   :  { %3059 = vmatprep.subr.mxu1 %v3227_v2  ;;  %3061 = vmatprep.mubr.msk.f32.mxu1 %vm3228_vm0, %v3227_v2 }
   0x8   :  { %261 = vmatprep.mubr.f32.mxu0 %v3227_v2  ;;  %3225 = vset.pattern.permute.xlu0 %v3237_v23 }
   0x9   :  { %3226 = vset.pattern.permute.xlu1 %v3237_v23 }
   0xa   :  { %345 = vrot.lane.b32.xlu0 %v15_v0, %s3230_s23  ;;  %347 = vrot.lane.b32.xlu1 %v16_v3, %s3230_s23 }
   0xe   :  { %343 = vrot.lane.b32.xlu0 %v14_v1, %s3230_s23  ;;  %349 = vrot.lane.b32.xlu1 %v17_v4, %s3230_s23 }
  0x12   :  { %509 = vrot.lane.b32.xlu0 %v15_v0, %s3231_s24  ;;  %511 = vrot.lane.b32.xlu1 %v16_v3, %s3231_s24 }
  0x16   :  { %507 = vrot.lane.b32.xlu0 %v14_v1, %s3231_s24  ;;  %513 = vrot.lane.b32.xlu1 %v17_v4, %s3231_s24 }
  0x1a   :  { %673 = vrot.lane.b32.xlu0 %v15_v0, %s3232_s25  ;;  %675 = vrot.lane.b32.xlu1 %v16_v3, %s3232_s25 }
  0x1e   :  { %671 = vrot.lane.b32.xlu0 %v14_v1, %s3232_s25  ;;  %677 = vrot.lane.b32.xlu1 %v17_v4, %s3232_s25 }
  0x22   :  { %837 = vrot.lane.b32.xlu0 %v15_v0, %s3233_s26  ;;  %839 = vrot.lane.b32.xlu1 %v16_v3, %s3233_s26 }
  0x26   :  { %835 = vrot.lane.b32.xlu0 %v14_v1, %s3233_s26  ;;  %841 = vrot.lane.b32.xlu1 %v17_v4, %s3233_s26 }
  0x2a   :  { %1001 = vrot.lane.b32.xlu0 %v15_v0, %s3234_s27  ;;  %1003 = vrot.lane.b32.xlu1 %v16_v3, %s3234_s27 }
  0x2e   :  { %999 = vrot.lane.b32.xlu0 %v14_v1, %s3234_s27  ;;  %1005 = vrot.lane.b32.xlu1 %v17_v4, %s3234_s27 }
  0x32   :  { %1165 = vrot.lane.b32.xlu0 %v15_v0, %s3235_s28  ;;  %1167 = vrot.lane.b32.xlu1 %v16_v3, %s3235_s28 }
  0x36   :  { %1163 = vrot.lane.b32.xlu0 %v14_v1, %s3235_s28  ;;  %1169 = vrot.lane.b32.xlu1 %v17_v4, %s3235_s28 }
  0x3a   :  { %1329 = vrot.lane.b32.xlu0 %v15_v0, %s3236_s29  ;;  %1331 = vrot.lane.b32.xlu1 %v16_v3, %s3236_s29 }
  0x3e   :  { %1327 = vrot.lane.b32.xlu0 %v14_v1, %s3236_s29  ;;  %1333 = vrot.lane.b32.xlu1 %v17_v4, %s3236_s29  ;;  %v3498_v4 = vld [vmem:[%s3638_s1 + $0x38] sm:$0xff] }
  0x42   :  { %1658 = vrot.lane.b32.xlu0 %v3322_v6, %s3229_s16  ;;  %1660 = vrot.lane.b32.xlu1 %v3327_v7, %s3229_s16 }
  0x46   :  { %1656 = vrot.lane.b32.xlu0 %v3336_v8, %s3229_s16  ;;  %1662 = vrot.lane.b32.xlu1 %v2988_v9, %s3229_s16 }
  0x4a   :  { %1820 = vrot.lane.b32.xlu0 %v3322_v6, %s3230_s23  ;;  %1822 = vrot.lane.b32.xlu1 %v3327_v7, %s3230_s23 }
  0x4e   :  { %1818 = vrot.lane.b32.xlu0 %v3336_v8, %s3230_s23  ;;  %1824 = vrot.lane.b32.xlu1 %v2988_v9, %s3230_s23 }
  0x52   :  { %1982 = vrot.lane.b32.xlu0 %v3322_v6, %s3231_s24  ;;  %1984 = vrot.lane.b32.xlu1 %v3327_v7, %s3231_s24 }
  0x56   :  { %1980 = vrot.lane.b32.xlu0 %v3336_v8, %s3231_s24  ;;  %1986 = vrot.lane.b32.xlu1 %v2988_v9, %s3231_s24 }
  0x5a   :  { %2144 = vrot.lane.b32.xlu0 %v3322_v6, %s3232_s25  ;;  %2146 = vrot.lane.b32.xlu1 %v3327_v7, %s3232_s25 }
  0x5e   :  { %2142 = vrot.lane.b32.xlu0 %v3336_v8, %s3232_s25  ;;  %2148 = vrot.lane.b32.xlu1 %v2988_v9, %s3232_s25 }
  0x62   :  { %2306 = vrot.lane.b32.xlu0 %v3322_v6, %s3233_s26  ;;  %2308 = vrot.lane.b32.xlu1 %v3327_v7, %s3233_s26 }
  0x66   :  { %2304 = vrot.lane.b32.xlu0 %v3336_v8, %s3233_s26  ;;  %2310 = vrot.lane.b32.xlu1 %v2988_v9, %s3233_s26 }
  0x6a   :  { %2468 = vrot.lane.b32.xlu0 %v3322_v6, %s3234_s27  ;;  %2470 = vrot.lane.b32.xlu1 %v3327_v7, %s3234_s27 }
  0x6e   :  { %2466 = vrot.lane.b32.xlu0 %v3336_v8, %s3234_s27  ;;  %2472 = vrot.lane.b32.xlu1 %v2988_v9, %s3234_s27 }
  0x72   :  { %2630 = vrot.lane.b32.xlu0 %v3322_v6, %s3235_s28  ;;  %2632 = vrot.lane.b32.xlu1 %v3327_v7, %s3235_s28 }
  0x74   :  { %v182_v10 = vpop.permute.xlu0 %181  ;;  %v180_v11 = vpop.permute.xlu1 %179 }
  0x75   :  { %v188_v17 = vsel %vm187_vm2, %v180_v11, %v182_v10 }
  0x76   :  { %2628 = vrot.lane.b32.xlu0 %v3336_v8, %s3235_s28  ;;  %2634 = vrot.lane.b32.xlu1 %v2988_v9, %s3235_s28 }
  0x78   :  { %v184_v12 = vpop.permute.xlu0 %183  ;;  %v186_v13 = vpop.permute.xlu1 %185 }
  0x79   :  { %v190_v14 = vsel %vm187_vm2, %v184_v12, %v186_v13  ;;  %v189_v15 = vsel %vm187_vm2, %v182_v10, %v184_v12 }
  0x7a   :  { %197 = vmatprep.subr.mxu0 %v189_v15  ;;  %3060 = vmatpush3.msra.mxu1 %v190_v14 }
  0x7b   :  { %2792 = vrot.lane.b32.xlu0 %v3322_v6, %s3236_s29  ;;  %198 = vmatpush1.msra.mxu0 %v188_v17  ;;  %v3514_v17 = vld [vmem:[%s3638_s1 + $0x40] sm:$0xff] }
  0x7c   :  { %3062 = vmatmul.mubr.msk.f32.vlgmr.msra.gmra.mrb[0].mxu1 %vm25_vm1, %v3391_v16  ;;  %v346_v18 = vpop.permute.xlu0 %345  ;;  %2794 = vrot.lane.b32.xlu1 %v3327_v7, %s3236_s29  ;;  %v348_v19 = vpop.permute.xlu1 %347 }
  0x7d   :  { %2962 = vmatmul.mubr.msk.f32.vlgmr.msra.gmra.mrb[0].mxu0 %vm25_vm1, %v3391_v16  ;;  %v353_v20 = vsel %vm351_vm3, %v346_v18, %v348_v19  ;;  %3064 = vmatprep.subr.mxu1 %v3227_v2 }
  0x7e   :  { %361 = vmatprep.subr.mxu0 %v353_v20  ;;  %3066 = vmatprep.mubr.msk.f32.mxu1 %vm3228_vm0, %v3227_v2 }
  0x7f   :  { %2790 = vrot.lane.b32.xlu0 %v3336_v8, %s3236_s29  ;;  %425 = vmatprep.mubr.f32.mxu0 %v3227_v2 }
  0x80   :  { %v344_v21 = vpop.permute.xlu0 %343  ;;  %2796 = vrot.lane.b32.xlu1 %v2988_v9, %s3236_s29  ;;  %v350_v22 = vpop.permute.xlu1 %349 }
  0x81   :  { %v352_v25 = vsel %vm351_vm3, %v344_v21, %v346_v18  ;;  %v354_v26 = vsel %vm351_vm3, %v348_v19, %v350_v22 }
  0x82   :  { %362 = vmatpush1.msra.mxu0 %v352_v25  ;;  %3065 = vmatpush3.msra.mxu1 %v354_v26 }
  0x83   :  { %3069 = vmatprep.subr.mxu1 %v3227_v2  ;;  %21 = vperm.xlu0 %3225, %v18_v24  }
  0x84   :  { %3067 = vmatmul.mubr.msk.f32.vlgmr.msra.gmra.mrb[0].mxu1 %vm25_vm1, %v3418_v27  ;;  %v510_v28 = vpop.permute.xlu0 %509  ;;  %v512_v29 = vpop.permute.xlu1 %511  ;;  %1500 = vperm.xlu1 %3226, %v18_v24  }
  0x85   :  { %2965 = vmatmul.mubr.msk.f32.vlgmr.msra.gmra.mrb[0].mxu0 %vm25_vm1, %v3418_v27  ;;  %v517_v30 = vsel %vm515_vm4, %v510_v28, %v512_v29  ;;  %3071 = vmatprep.mubr.msk.f32.mxu1 %vm3228_vm0, %v3227_v2 }
  0x86   :  { %525 = vmatprep.subr.mxu0 %v517_v30  ;;  %589 = vmatprep.mubr.f32.mxu0 %v3227_v2 }
  0x88   :  { %v508_v31 = vpop.permute.xlu0 %507  ;;  %v514_v32 = vpop.permute.xlu1 %513 }
  0x89   :  { %v516_v33 = vsel %vm515_vm4, %v508_v31, %v510_v28  ;;  %v518_v34 = vsel %vm515_vm4, %v512_v29, %v514_v32 }
  0x8a   :  { %526 = vmatpush1.msra.mxu0 %v516_v33  ;;  %3070 = vmatpush3.msra.mxu1 %v518_v34 }
  0x8b   :  { %3074 = vmatprep.subr.mxu1 %v3227_v2 }
  0x8c   :  { %3072 = vmatmul.mubr.msk.f32.vlgmr.msra.gmra.mrb[0].mxu1 %vm25_vm1, %v3434_v35  ;;  %v674_v36 = vpop.permute.xlu0 %673  ;;  %v676_v37 = vpop.permute.xlu1 %675 }
  0x8d   :  { %2968 = vmatmul.mubr.msk.f32.vlgmr.msra.gmra.mrb[0].mxu0 %vm25_vm1, %v3434_v35  ;;  %v681_v38 = vsel %vm679_vm5, %v674_v36, %v676_v37  ;;  %3076 = vmatprep.mubr.msk.f32.mxu1 %vm3228_vm0, %v3227_v2 }
  0x8e   :  { %689 = vmatprep.subr.mxu0 %v681_v38  ;;  %753 = vmatprep.mubr.f32.mxu0 %v3227_v2 }
  0x90   :  { %v672_v39 = vpop.permute.xlu0 %671  ;;  %v678_v40 = vpop.permute.xlu1 %677 }
  0x91   :  { %v680_v41 = vsel %vm679_vm5, %v672_v39, %v674_v36  ;;  %v682_v42 = vsel %vm679_vm5, %v676_v37, %v678_v40 }
  0x92   :  { %690 = vmatpush1.msra.mxu0 %v680_v41  ;;  %3075 = vmatpush3.msra.mxu1 %v682_v42 }
  0x93   :  { %3079 = vmatprep.subr.mxu1 %v3227_v2 }
  0x94   :  { %3077 = vmatmul.mubr.msk.f32.vlgmr.msra.gmra.mrb[0].mxu1 %vm25_vm1, %v3450_v43  ;;  %v838_v44 = vpop.permute.xlu0 %837  ;;  %v840_v45 = vpop.permute.xlu1 %839 }
  0x95   :  { %2971 = vmatmul.mubr.msk.f32.vlgmr.msra.gmra.mrb[0].mxu0 %vm25_vm1, %v3450_v43  ;;  %v845_v46 = vsel %vm843_vm6, %v838_v44, %v840_v45  ;;  %3081 = vmatprep.mubr.msk.f32.mxu1 %vm3228_vm0, %v3227_v2 }
  0x96   :  { %853 = vmatprep.subr.mxu0 %v845_v46  ;;  %917 = vmatprep.mubr.f32.mxu0 %v3227_v2 }
  0x98   :  { %v836_v47 = vpop.permute.xlu0 %835  ;;  %v842_v48 = vpop.permute.xlu1 %841 }
  0x99   :  { %v844_v49 = vsel %vm843_vm6, %v836_v47, %v838_v44  ;;  %v846_v50 = vsel %vm843_vm6, %v840_v45, %v842_v48 }
  0x9a   :  { %854 = vmatpush1.msra.mxu0 %v844_v49  ;;  %3080 = vmatpush3.msra.mxu1 %v846_v50 }
  0x9b   :  { %3084 = vmatprep.subr.mxu1 %v3227_v2 }
  0x9c   :  { %3082 = vmatmul.mubr.msk.f32.vlgmr.msra.gmra.mrb[0].mxu1 %vm25_vm1, %v3466_v51  ;;  %v1002_v52 = vpop.permute.xlu0 %1001  ;;  %v1004_v53 = vpop.permute.xlu1 %1003 }
  0x9d   :  { %2974 = vmatmul.mubr.msk.f32.vlgmr.msra.gmra.mrb[0].mxu0 %vm25_vm1, %v3466_v51  ;;  %v1009_v54 = vsel %vm1007_vm7, %v1002_v52, %v1004_v53  ;;  %3086 = vmatprep.mubr.msk.f32.mxu1 %vm3228_vm0, %v3227_v2 }
  0x9e   :  { %1017 = vmatprep.subr.mxu0 %v1009_v54  ;;  %1081 = vmatprep.mubr.f32.mxu0 %v3227_v2 }
  0xa0   :  { %v1000_v55 = vpop.permute.xlu0 %999  ;;  %v1006_v56 = vpop.permute.xlu1 %1005 }
  0xa1   :  { %v1008_v57 = vsel %vm1007_vm7, %v1000_v55, %v1002_v52  ;;  %v1010_v58 = vsel %vm1007_vm7, %v1004_v53, %v1006_v56 }
  0xa2   :  { %1018 = vmatpush1.msra.mxu0 %v1008_v57  ;;  %3085 = vmatpush3.msra.mxu1 %v1010_v58 }
  0xa3   :  { %3089 = vmatprep.subr.mxu1 %v3227_v2 }
  0xa4   :  { %3087 = vmatmul.mubr.msk.f32.vlgmr.msra.gmra.mrb[0].mxu1 %vm25_vm1, %v3482_v59  ;;  %v1166_v60 = vpop.permute.xlu0 %1165  ;;  %v1168_v61 = vpop.permute.xlu1 %1167 }
  0xa5   :  { %2977 = vmatmul.mubr.msk.f32.vlgmr.msra.gmra.mrb[0].mxu0 %vm25_vm1, %v3482_v59  ;;  %v1173_v62 = vsel %vm1171_vm8, %v1166_v60, %v1168_v61  ;;  %3091 = vmatprep.mubr.msk.f32.mxu1 %vm3228_vm0, %v3227_v2 }
  0xa6   :  { %1181 = vmatprep.subr.mxu0 %v1173_v62  ;;  %1245 = vmatprep.mubr.f32.mxu0 %v3227_v2 }
  0xa8   :  { %v1164_v63 = vpop.permute.xlu0 %1163  ;;  %v1170_v0 = vpop.permute.xlu1 %1169 }
  0xa9   :  { %v1172_v1 = vsel %vm1171_vm8, %v1164_v63, %v1166_v60  ;;  %v1174_v3 = vsel %vm1171_vm8, %v1168_v61, %v1170_v0 }
  0xaa   :  { %1182 = vmatpush1.msra.mxu0 %v1172_v1  ;;  %3090 = vmatpush3.msra.mxu1 %v1174_v3 }
  0xab   :  { %3094 = vmatprep.subr.mxu1 %v3227_v2 }
  0xac   :  { %3092 = vmatmul.mubr.msk.f32.vlgmr.msra.gmra.mrb[0].mxu1 %vm25_vm1, %v3498_v4  ;;  %v1330_v9 = vpop.permute.xlu0 %1329  ;;  %v1332_v10 = vpop.permute.xlu1 %1331 }
  0xad   :  { %2980 = vmatmul.mubr.msk.f32.vlgmr.msra.gmra.mrb[0].mxu0 %vm25_vm1, %v3498_v4  ;;  %v1337_v11 = vsel %vm1335_vm9, %v1330_v9, %v1332_v10  ;;  %3096 = vmatprep.mubr.msk.f32.mxu1 %vm3228_vm0, %v3227_v2 }
  0xae   :  { %1345 = vmatprep.subr.mxu0 %v1337_v11  ;;  %1409 = vmatprep.mubr.f32.mxu0 %v3227_v2 }
  0xb0   :  { %v1328_v12 = vpop.permute.xlu0 %1327  ;;  %v1334_v13 = vpop.permute.xlu1 %1333 }
  0xb1   :  { %v1336_v14 = vsel %vm1335_vm9, %v1328_v12, %v1330_v9  ;;  %v1338_v15 = vsel %vm1335_vm9, %v1332_v10, %v1334_v13 }
  0xb2   :  { %1346 = vmatpush1.msra.mxu0 %v1336_v14  ;;  %3095 = vmatpush3.msra.mxu1 %v1338_v15 }
  0xb3   :  { %3099 = vmatprep.subr.mxu1 %v3227_v2  ;;  %1507 = vmatprep.subr.mxu0 %v3322_v6 }
  0xb4   :  { %3097 = vmatmul.mubr.msk.f32.vlgmr.msra.gmra.mrb[0].mxu1 %vm25_vm1, %v3514_v17  ;;  %v1659_v18 = vpop.permute.xlu0 %1658  ;;  %v1661_v19 = vpop.permute.xlu1 %1660 }
  0xb5   :  { %2983 = vmatmul.mubr.msk.f32.vlgmr.msra.gmra.mrb[0].mxu0 %vm25_vm1, %v3514_v17  ;;  %3100 = vmatpush3.msra.mxu1 %v3327_v7  ;;  %v1665_v20 = vsel %vm187_vm2, %v1659_v18, %v1661_v19 }
  0xb6   :  { %3101 = vmatprep.mubr.msk.f32.mxu1 %vm3228_vm0, %v3227_v2  ;;  %1508 = vmatpush1.msra.mxu0 %v3336_v8 }
  0xb7   :  { %1571 = vmatprep.mubr.f32.mxu0 %v3227_v2  ;;  %1673 = vmatprep.subr.mxu0 %v1665_v20 }
  0xb8   :  { %3102 = vmatmul.mubr.msk.f32.vlgmr.msra.gmra.mrb[2].mxu1 %vm25_vm1, %v3279_v5  ;;  %v1657_v6 = vpop.permute.xlu0 %1656  ;;  %v1663_v21 = vpop.permute.xlu1 %1662  ;;  %3104 = vmatprep.subr.mxu1 %v3227_v2 }
  0xb9   :  { %2989 = vmatmul.mubr.msk.f32.vlgmr.msra.gmra.mrb[2].mxu0 %vm25_vm1, %v3279_v5  ;;  %v1664_v7 = vsel %vm187_vm2, %v1657_v6, %v1659_v18  ;;  %v1666_v22 = vsel %vm187_vm2, %v1661_v19, %v1663_v21  ;;  %3106 = vmatprep.mubr.msk.f32.mxu1 %vm3228_vm0, %v3227_v2 }
  0xba   :  { %1674 = vmatpush1.msra.mxu0 %v1664_v7  ;;  %3105 = vmatpush3.msra.mxu1 %v1666_v22 }
  0xbb   :  { %1737 = vmatprep.mubr.f32.mxu0 %v3227_v2  ;;  %3109 = vmatprep.subr.mxu1 %v3227_v2 }
  0xbc   :  { %v1821_v8 = vpop.permute.xlu0 %1820  ;;  %v1823_v23 = vpop.permute.xlu1 %1822 }
  0xbd   :  { %v1827_v24 = vsel %vm351_vm3, %v1821_v8, %v1823_v23 }
  0xbe   :  { %1835 = vmatprep.subr.mxu0 %v1827_v24 }
  0xc0   :  { %3107 = vmatmul.mubr.msk.f32.vlgmr.msra.gmra.mrb[2].mxu1 %vm25_vm1, %v3391_v16  ;;  %v1819_v5 = vpop.permute.xlu0 %1818  ;;  %v1825_v25 = vpop.permute.xlu1 %1824 }
  0xc1   :  { %2992 = vmatmul.mubr.msk.f32.vlgmr.msra.gmra.mrb[2].mxu0 %vm25_vm1, %v3391_v16  ;;  %v1826_v26 = vsel %vm351_vm3, %v1819_v5, %v1821_v8  ;;  %v1828_v28 = vsel %vm351_vm3, %v1823_v23, %v1825_v25  ;;  %3111 = vmatprep.mubr.msk.f32.mxu1 %vm3228_vm0, %v3227_v2 }
  0xc2   :  { %1836 = vmatpush1.msra.mxu0 %v1826_v26  ;;  %3110 = vmatpush3.msra.mxu1 %v1828_v28 }
  0xc3   :  { %1899 = vmatprep.mubr.f32.mxu0 %v3227_v2  ;;  %3114 = vmatprep.subr.mxu1 %v3227_v2 }
  0xc4   :  { %v1983_v29 = vpop.permute.xlu0 %1982  ;;  %v1985_v30 = vpop.permute.xlu1 %1984 }
  0xc5   :  { %v1989_v31 = vsel %vm515_vm4, %v1983_v29, %v1985_v30 }
  0xc6   :  { %1997 = vmatprep.subr.mxu0 %v1989_v31 }
  0xc8   :  { %3112 = vmatmul.mubr.msk.f32.vlgmr.msra.gmra.mrb[2].mxu1 %vm25_vm1, %v3418_v27  ;;  %v1981_v16 = vpop.permute.xlu0 %1980  ;;  %v1987_v32 = vpop.permute.xlu1 %1986 }
  0xc9   :  { %2995 = vmatmul.mubr.msk.f32.vlgmr.msra.gmra.mrb[2].mxu0 %vm25_vm1, %v3418_v27  ;;  %v1988_v33 = vsel %vm515_vm4, %v1981_v16, %v1983_v29  ;;  %v1990_v34 = vsel %vm515_vm4, %v1985_v30, %v1987_v32  ;;  %3116 = vmatprep.mubr.msk.f32.mxu1 %vm3228_vm0, %v3227_v2 }
  0xca   :  { %1998 = vmatpush1.msra.mxu0 %v1988_v33  ;;  %3115 = vmatpush3.msra.mxu1 %v1990_v34 }
  0xcb   :  { %2061 = vmatprep.mubr.f32.mxu0 %v3227_v2  ;;  %3119 = vmatprep.subr.mxu1 %v3227_v2 }
  0xcc   :  { %v2145_v36 = vpop.permute.xlu0 %2144  ;;  %v2147_v37 = vpop.permute.xlu1 %2146 }
  0xcd   :  { %v2151_v38 = vsel %vm679_vm5, %v2145_v36, %v2147_v37 }
  0xce   :  { %2159 = vmatprep.subr.mxu0 %v2151_v38 }
  0xd0   :  { %3117 = vmatmul.mubr.msk.f32.vlgmr.msra.gmra.mrb[2].mxu1 %vm25_vm1, %v3434_v35  ;;  %v2143_v27 = vpop.permute.xlu0 %2142  ;;  %v2149_v39 = vpop.permute.xlu1 %2148 }
  0xd1   :  { %2998 = vmatmul.mubr.msk.f32.vlgmr.msra.gmra.mrb[2].mxu0 %vm25_vm1, %v3434_v35  ;;  %v2150_v40 = vsel %vm679_vm5, %v2143_v27, %v2145_v36  ;;  %v2152_v41 = vsel %vm679_vm5, %v2147_v37, %v2149_v39  ;;  %3121 = vmatprep.mubr.msk.f32.mxu1 %vm3228_vm0, %v3227_v2 }
  0xd2   :  { %2160 = vmatpush1.msra.mxu0 %v2150_v40  ;;  %3120 = vmatpush3.msra.mxu1 %v2152_v41 }
  0xd3   :  { %2223 = vmatprep.mubr.f32.mxu0 %v3227_v2  ;;  %3124 = vmatprep.subr.mxu1 %v3227_v2 }
  0xd4   :  { %v2307_v42 = vpop.permute.xlu0 %2306  ;;  %v2309_v44 = vpop.permute.xlu1 %2308 }
  0xd5   :  { %v2313_v45 = vsel %vm843_vm6, %v2307_v42, %v2309_v44 }
  0xd6   :  { %2321 = vmatprep.subr.mxu0 %v2313_v45 }
  0xd8   :  { %3122 = vmatmul.mubr.msk.f32.vlgmr.msra.gmra.mrb[2].mxu1 %vm25_vm1, %v3450_v43  ;;  %v2305_v35 = vpop.permute.xlu0 %2304  ;;  %v2311_v46 = vpop.permute.xlu1 %2310 }
  0xd9   :  { %3001 = vmatmul.mubr.msk.f32.vlgmr.msra.gmra.mrb[2].mxu0 %vm25_vm1, %v3450_v43  ;;  %v2312_v47 = vsel %vm843_vm6, %v2305_v35, %v2307_v42  ;;  %v2314_v48 = vsel %vm843_vm6, %v2309_v44, %v2311_v46  ;;  %3126 = vmatprep.mubr.msk.f32.mxu1 %vm3228_vm0, %v3227_v2 }
  0xda   :  { %2322 = vmatpush1.msra.mxu0 %v2312_v47  ;;  %3125 = vmatpush3.msra.mxu1 %v2314_v48 }
  0xdb   :  { %2385 = vmatprep.mubr.f32.mxu0 %v3227_v2  ;;  %3129 = vmatprep.subr.mxu1 %v3227_v2 }
  0xdc   :  { %v2469_v49 = vpop.permute.xlu0 %2468  ;;  %v2471_v50 = vpop.permute.xlu1 %2470 }
  0xdd   :  { %v2475_v52 = vsel %vm1007_vm7, %v2469_v49, %v2471_v50 }
  0xde   :  { %2483 = vmatprep.subr.mxu0 %v2475_v52 }
  0xe0   :  { %3127 = vmatmul.mubr.msk.f32.vlgmr.msra.gmra.mrb[2].mxu1 %vm25_vm1, %v3466_v51  ;;  %v2467_v43 = vpop.permute.xlu0 %2466  ;;  %v2473_v53 = vpop.permute.xlu1 %2472 }
  0xe1   :  { %3004 = vmatmul.mubr.msk.f32.vlgmr.msra.gmra.mrb[2].mxu0 %vm25_vm1, %v3466_v51  ;;  %v2474_v54 = vsel %vm1007_vm7, %v2467_v43, %v2469_v49  ;;  %v2476_v55 = vsel %vm1007_vm7, %v2471_v50, %v2473_v53  ;;  %3131 = vmatprep.mubr.msk.f32.mxu1 %vm3228_vm0, %v3227_v2 }
  0xe2   :  { %2484 = vmatpush1.msra.mxu0 %v2474_v54  ;;  %3130 = vmatpush3.msra.mxu1 %v2476_v55 }
  0xe3   :  { %2547 = vmatprep.mubr.f32.mxu0 %v3227_v2  ;;  %3134 = vmatprep.subr.mxu1 %v3227_v2 }
  0xe4   :  { %v2631_v56 = vpop.permute.xlu0 %2630  ;;  %v2633_v57 = vpop.permute.xlu1 %2632 }
  0xe5   :  { %v2637_v58 = vsel %vm1171_vm8, %v2631_v56, %v2633_v57 }
  0xe6   :  { %2645 = vmatprep.subr.mxu0 %v2637_v58 }
  0xe8   :  { %3132 = vmatmul.mubr.msk.f32.vlgmr.msra.gmra.mrb[2].mxu1 %vm25_vm1, %v3482_v59  ;;  %v2629_v51 = vpop.permute.xlu0 %2628  ;;  %v2635_v60 = vpop.permute.xlu1 %2634 }
  0xe9   :  { %3007 = vmatmul.mubr.msk.f32.vlgmr.msra.gmra.mrb[2].mxu0 %vm25_vm1, %v3482_v59  ;;  %v2636_v61 = vsel %vm1171_vm8, %v2629_v51, %v2631_v56  ;;  %v2638_v62 = vsel %vm1171_vm8, %v2633_v57, %v2635_v60  ;;  %3136 = vmatprep.mubr.msk.f32.mxu1 %vm3228_vm0, %v3227_v2 }
  0xea   :  { %2646 = vmatpush1.msra.mxu0 %v2636_v61  ;;  %3135 = vmatpush3.msra.mxu1 %v2638_v62 }
  0xeb   :  { %2709 = vmatprep.mubr.f32.mxu0 %v3227_v2  ;;  %3139 = vmatprep.subr.mxu1 %v3227_v2 }
  0xed   :  { %v2793_v63 = vpop.permute.xlu0 %2792 }
  0xee   :  { %v2795_v0 = vpop.permute.xlu1 %2794 }
  0xef   :  { %v2799_v1 = vsel %vm1335_vm9, %v2793_v63, %v2795_v0 }
  0xf0   :  { %3137 = vmatmul.mubr.msk.f32.vlgmr.msra.gmra.mrb[2].mxu1 %vm25_vm1, %v3498_v4  ;;  %2807 = vmatprep.subr.mxu0 %v2799_v1 }
  0xf1   :  { %3010 = vmatmul.mubr.msk.f32.vlgmr.msra.gmra.mrb[2].mxu0 %vm25_vm1, %v3498_v4  ;;  %v2791_v59 = vpop.permute.xlu0 %2790  ;;  %3141 = vmatprep.mubr.msk.f32.mxu1 %vm3228_vm0, %v3227_v2 }
  0xf2   :  { %v2798_v3 = vsel %vm1335_vm9, %v2791_v59, %v2793_v63  ;;  %v2797_v9 = vpop.permute.xlu1 %2796  ;;  %2871 = vmatprep.mubr.f32.mxu0 %v3227_v2 }
  0xf3   :  { %v2800_v10 = vsel %vm1335_vm9, %v2795_v0, %v2797_v9  ;;  %2808 = vmatpush1.msra.mxu0 %v2798_v3 }
  0xf4   :  { %3140 = vmatpush3.msra.mxu1 %v2800_v10 }
  0xf8   :  { %3142 = vmatmul.mubr.msk.f32.vlgmr.msra.gmra.mrb[2].mxu1 %vm25_vm1, %v3514_v17 }
  0xf9   :  { %3013 = vmatmul.mubr.msk.f32.vlgmr.msra.gmra.mrb[2].mxu0 %vm25_vm1, %v3514_v17 }
 0x102   :  { %v22_v4 = vpop.permute.xlu0 %21 }
 0x103   :  { %v1501_v17 = vpop.permute.xlu1 %1500 }
 0x187   :  { %v1482_v11 = vpop.f32.mrb[0].mxu1 }
 0x188   :  { %v3146_v12 = vadd.f32 %v1482_v11, %v22_v4  ;;  %v1411_v13 = vpop.f32.mrb[0].mxu0  ;;  %v3098_v14 = vpop.f32.mrb[1].mxu1 }
 0x189   :  { %v3144_v15 = vadd.f32 %v1411_v13, %v22_v4  ;;  %v1413_v18 = vpop.f32.mrb[1].mxu0 }
 0x18a   :  { %1491 = vst [vmem:[%s3640_s3 + $0x10] sm:$0xff] %v3146_v12  ;;  %v3145_v2 = vadd.f32 %v1413_v18, %v22_v4 }
 0x18b   :  { %1489 = vst [vmem:[%s3640_s3] sm:$0xff] %v3144_v15 }
 0x18c   :  { %1490 = vst [vmem:[%s3640_s3 + $0x8] sm:$0xff] %v3145_v2 }
 0x1cb   :  { %v2944_v19 = vpop.f32.mrb[2].mxu1 }
 0x1cc   :  { %v3149_v20 = vadd.f32 %v2944_v19, %v1501_v17  ;;  %v2873_v6 = vpop.f32.mrb[2].mxu0  ;;  %v3143_v21 = vpop.f32.mrb[3].mxu1 }
 0x1cd   :  { %v3147_v7 = vadd.f32 %v2873_v6, %v1501_v17  ;;  %v2875_v22 = vpop.f32.mrb[3].mxu0 }
 0x1ce   :  { %3017 = vst [vmem:[%s3640_s3 + $0x28] sm:$0xff] %v3149_v20  ;;  %v3148_v8 = vadd.f32 %v2875_v22, %v1501_v17 }
 0x1cf   :  { %3015 = vst [vmem:[%s3640_s3 + $0x18] sm:$0xff] %v3147_v7 }
 0x1d0   :  { %3016 = vst [vmem:[%s3640_s3 + $0x20] sm:$0xff] %v3148_v8 }

</bundles_post_ra>
